<compile_context>
chip_gen: v7x
topology: tpu7x:2x2x1
jax: 0.10.0
libtpu: 0.0.40
codegen_flags: <defaults>
</compile_context>

<pallas_src>
import jax
import jax.numpy as jnp
from jax.experimental import pallas as pl
from jax.experimental.pallas import tpu as pltpu

NEG_SLOPE = 0.01   # F.leaky_relu default negative_slope
LANE = 128
SUBLANE = 8


def _leaky_relu(x):
    return jnp.where(x > 0, x, NEG_SLOPE * x)


def _round_up(n, m):
    return ((n + m - 1) // m) * m


def mlp_kernel(x_ref, w1_ref, b1_ref, w2_ref, b2_ref, w3_ref, b3_ref, o_ref):
    # x arrives in its native dtype; cast to the MXU operand dtype on the VPU
    # (hidden under the DMA) instead of paying a wrapper-side HBM pass.
    x = x_ref[...].astype(w1_ref.dtype)                                  # (TB, Din)
    # fc1 + leaky_relu (MXU -> f32 accumulator; activations stay f32 on the VPU)
    h1 = jnp.dot(x, w1_ref[...], preferred_element_type=jnp.float32)
    h1 = _leaky_relu(h1 + b1_ref[...])
    # fc2 + leaky_relu
    h2 = jnp.dot(h1.astype(w2_ref.dtype), w2_ref[...],
                 preferred_element_type=jnp.float32)
    h2 = _leaky_relu(h2 + b2_ref[...])
    # out (unpadded N = d_out)
    y = jnp.dot(h2.astype(w3_ref.dtype), w3_ref[...],
                preferred_element_type=jnp.float32)
    o_ref[...] = (y + b3_ref[...]).astype(o_ref.dtype)


def _choose_tile_b(batch, requested, operand_itemsize):
    """Largest aligned batch tile that still yields >=2 grid steps when B allows
    (v7x megacore split) and keeps last-tile padding waste bounded."""
    align = 16 if operand_itemsize < 4 else SUBLANE   # bf16 packs 16 rows / vreg
    half = _round_up(max(1, -(-batch // 2)), align)   # ceil(B/2), aligned
    tile = min(_round_up(max(requested, align), align), half)
    tile = max(SUBLANE, min(tile, _round_up(batch, SUBLANE)))
    return tile


def classifier_forward(x, params, *, tile_b=2048, compute_dtype=jnp.bfloat16):
    """x: (B, input_dim).  params: dict of w1,b1,w2,b2,w3,b3.

    compute_dtype: dtype of the MXU operands (weights + in-kernel x cast).
    bf16 is the fast path on v5e, v6e and v7x alike; accumulation, bias-add and
    leaky_relu always run in f32. Pass jnp.float32 for a bit-exact path.
    """
    w1, b1 = params["w1"], params["b1"]
    w2, b2 = params["w2"], params["b2"]
    w3, b3 = params["w3"], params["b3"]

    B, d_in = x.shape
    hidden = w1.shape[1]
    d_out = w3.shape[1]

    # Hidden is the only dim that feeds a second matmul as K: pad it to one
    # lane width (128). Do NOT pad further to "fill" the MXU — the kernel is
    # HBM-bound; extra zeros only burn MXU cycles and VMEM.
    h_p = _round_up(hidden, LANE)

    itemsize = jnp.dtype(compute_dtype).itemsize
    tile_b = _choose_tile_b(B, tile_b, itemsize)
    grid = (pl.cdiv(B, tile_b),)

    # Parameters are tiny: pad/cast once, pin them VMEM-resident (const map).
    w1p = jnp.pad(w1, ((0, 0), (0, h_p - hidden))).astype(compute_dtype)
    w2p = jnp.pad(w2, ((0, h_p - hidden), (0, h_p - hidden))).astype(compute_dtype)
    w3p = jnp.pad(w3, ((0, h_p - hidden), (0, 0))).astype(compute_dtype)
    b1p = jnp.pad(b1, ((0, 0), (0, h_p - hidden))).astype(jnp.float32)
    b2p = jnp.pad(b2, ((0, 0), (0, h_p - hidden))).astype(jnp.float32)
    b3p = b3.astype(jnp.float32)

    param_bytes = ((w1p.size + w2p.size + w3p.size) * itemsize
                   + (b1p.size + b2p.size + b3p.size) * 4)
    flops = 2 * B * (d_in * h_p + h_p * h_p + h_p * d_out)
    bytes_accessed = x.size * x.dtype.itemsize + param_bytes + B * d_out * 4

    # Scoped-VMEM budget: double-buffered x/y streams + resident params.
    # Only override the compiler default when we actually need more than the
    # smallest (v5e) 16 MiB scoped default.
    x_tile_bytes = tile_b * d_in * x.dtype.itemsize
    y_tile_bytes = tile_b * d_out * 4
    need = 2 * (x_tile_bytes + y_tile_bytes + param_bytes) + (2 << 20)
    vmem_limit = None if need <= (16 << 20) else int(min(need, 96 << 20))

    const = lambda i: (0, 0)
    out = pl.pallas_call(
        mlp_kernel,
        out_shape=jax.ShapeDtypeStruct((B, d_out), jnp.float32),
        grid_spec=pltpu.PrefetchScalarGridSpec(
            num_scalar_prefetch=0,
            grid=grid,
            in_specs=[
                pl.BlockSpec((tile_b, d_in), lambda i: (i, 0)),   # x tile (streamed)
                pl.BlockSpec((d_in, h_p), const),                 # w1 (resident)
                pl.BlockSpec((1, h_p), const),                    # b1
                pl.BlockSpec((h_p, h_p), const),                  # w2
                pl.BlockSpec((1, h_p), const),                    # b2
                pl.BlockSpec((h_p, d_out), const),                # w3
                pl.BlockSpec((1, d_out), const),                  # b3
            ],
            out_specs=pl.BlockSpec((tile_b, d_out), lambda i: (i, 0)),
        ),
        compiler_params=pltpu.CompilerParams(
            dimension_semantics=("parallel",),
            vmem_limit_bytes=vmem_limit,
        ),
        cost_estimate=pl.CostEstimate(
            flops=flops, transcendentals=0, bytes_accessed=bytes_accessed
        ),
    )(x, w1p, b1p, w2p, b2p, w3p, b3p)
    return out


def init_params(key, input_dim, output_dim, hidden_dim=64):
    """Deterministic synthetic init (matches the PyTorch module's shapes)."""
    ks = jax.random.split(key, 6)

    def linear(kw, kb, fan_in, fan_out):
        bound = 1.0 / jnp.sqrt(fan_in)
        w = jax.random.uniform(kw, (fan_in, fan_out), jnp.float32, -bound, bound)
        b = jax.random.uniform(kb, (1, fan_out), jnp.float32, -bound, bound)
        return w, b

    w1, b1 = linear(ks[0], ks[1], input_dim, hidden_dim)
    w2, b2 = linear(ks[2], ks[3], hidden_dim, hidden_dim)
    w3, b3 = linear(ks[4], ks[5], hidden_dim, output_dim)
    return {"w1": w1, "b1": b1, "w2": w2, "b2": b2, "w3": w3, "b3": b3}


def _reference(x, p):
    h1 = _leaky_relu(x @ p["w1"] + p["b1"])
    h2 = _leaky_relu(h1 @ p["w2"] + p["b2"])
    return h2 @ p["w3"] + p["b3"]


if __name__ == "__main__":
    key = jax.random.PRNGKey(0)
    k_x1, k_x2, k_p = jax.random.split(key, 3)

    INPUT_DIM, OUTPUT_DIM, HIDDEN_DIM = 32, 10, 64
    params = init_params(k_p, INPUT_DIM, OUTPUT_DIM, HIDDEN_DIM)

    # Small batch (single grid step) + a batch that exercises the multi-step
    # grid with a masked partial last tile.
    x_small = jax.random.normal(k_x1, (8, INPUT_DIM), dtype=jnp.float32)
    x_big = jax.random.normal(k_x2, (300, INPUT_DIM), dtype=jnp.float32)

    for x in (x_small, x_big):
        y_ref = _reference(x, params)

        # Exact-precision path (f32 MXU operands).
        y_f32 = jax.block_until_ready(
            classifier_forward(x, params, compute_dtype=jnp.float32))
        assert y_f32.shape == y_ref.shape, y_f32.shape
        assert jnp.allclose(y_f32, y_ref, atol=1e-4, rtol=1e-4), "f32 mismatch"

        # Default fast path: bf16 MXU operands, f32 accumulation.
        y_bf16 = jax.block_until_ready(classifier_forward(x, params))
        assert y_bf16.shape == y_ref.shape, y_bf16.shape
        assert jnp.allclose(y_bf16, y_ref, atol=1e-1, rtol=1e-1), "bf16 mismatch"

    print("KERNEL_OK")
</pallas_src>

<mosaic_0001>
module attributes {stable_mosaic.version = 11 : i64} {
  func.func @mlp_kernel(%arg0: i32, %arg1: memref<8x32xf32, #tpu.memory_space<vmem>>, %arg2: memref<32x128xf32, #tpu.memory_space<vmem>>, %arg3: memref<1x128xf32, #tpu.memory_space<vmem>>, %arg4: memref<128x128xf32, #tpu.memory_space<vmem>>, %arg5: memref<1x128xf32, #tpu.memory_space<vmem>>, %arg6: memref<128x10xf32, #tpu.memory_space<vmem>>, %arg7: memref<1x10xf32, #tpu.memory_space<vmem>>, %arg8: memref<8x10xf32, #tpu.memory_space<vmem>>) attributes {dimension_semantics = [#tpu.dimension_semantics<parallel>], iteration_bounds = array<i64: 1>, scalar_prefetch = 0 : i64, scratch_operands = 0 : i64, tpu.core_type = #tpu.core_type<tc>, window_params = [{transform_indices = @transform_0, window_bounds = array<i64: 8, 32>}, {pipeline_mode = #tpu.pipeline_mode<synchronous>, transform_indices = @transform_1, window_bounds = array<i64: 32, 128>}, {pipeline_mode = #tpu.pipeline_mode<synchronous>, transform_indices = @transform_2, window_bounds = array<i64: 1, 128>}, {pipeline_mode = #tpu.pipeline_mode<synchronous>, transform_indices = @transform_3, window_bounds = array<i64: 128, 128>}, {pipeline_mode = #tpu.pipeline_mode<synchronous>, transform_indices = @transform_4, window_bounds = array<i64: 1, 128>}, {pipeline_mode = #tpu.pipeline_mode<synchronous>, transform_indices = @transform_5, window_bounds = array<i64: 128, 10>}, {pipeline_mode = #tpu.pipeline_mode<synchronous>, transform_indices = @transform_6, window_bounds = array<i64: 1, 10>}, {transform_indices = @transform_7, window_bounds = array<i64: 8, 10>}]} {
    %c0 = arith.constant 0 : index
    %c0_0 = arith.constant 0 : index
    %0 = vector.load %arg1[%c0, %c0_0] : memref<8x32xf32, #tpu.memory_space<vmem>>, vector<8x32xf32>
    %c0_1 = arith.constant 0 : index
    %c0_2 = arith.constant 0 : index
    %1 = vector.load %arg2[%c0_1, %c0_2] : memref<32x128xf32, #tpu.memory_space<vmem>>, vector<32x128xf32>
    %cst = arith.constant dense<0.000000e+00> : vector<8x128xf32>
    %2 = tpu.matmul %0, %1, %cst {dimension_numbers = #tpu.dot_dimension_numbers<[1], [0], [0], [1], [0, 0, 1, 1], [], []>} : vector<8x32xf32>, vector<32x128xf32>, vector<8x128xf32> -> vector<8x128xf32>
    %c0_3 = arith.constant 0 : index
    %c0_4 = arith.constant 0 : index
    %3 = vector.load %arg3[%c0_3, %c0_4] : memref<1x128xf32, #tpu.memory_space<vmem>>, vector<1x128xf32>
    %4 = vector.broadcast %3 : vector<1x128xf32> to vector<8x128xf32>
    %5 = arith.addf %2, %4 : vector<8x128xf32>
    %cst_5 = arith.constant 0.000000e+00 : f32
    %6 = vector.broadcast %cst_5 : f32 to vector<8x128xf32>
    %7 = arith.cmpf ogt, %5, %6 : vector<8x128xf32>
    %cst_6 = arith.constant 0.00999999977 : f32
    %8 = vector.broadcast %cst_6 : f32 to vector<8x128xf32>
    %9 = arith.mulf %8, %5 : vector<8x128xf32>
    %10 = arith.select %7, %5, %9 : vector<8x128xi1>, vector<8x128xf32>
    %c0_7 = arith.constant 0 : index
    %c0_8 = arith.constant 0 : index
    %11 = vector.load %arg4[%c0_7, %c0_8] : memref<128x128xf32, #tpu.memory_space<vmem>>, vector<128x128xf32>
    %cst_9 = arith.constant dense<0.000000e+00> : vector<8x128xf32>
    %12 = tpu.matmul %10, %11, %cst_9 {dimension_numbers = #tpu.dot_dimension_numbers<[1], [0], [0], [1], [0, 0, 1, 1], [], []>} : vector<8x128xf32>, vector<128x128xf32>, vector<8x128xf32> -> vector<8x128xf32>
    %c0_10 = arith.constant 0 : index
    %c0_11 = arith.constant 0 : index
    %13 = vector.load %arg5[%c0_10, %c0_11] : memref<1x128xf32, #tpu.memory_space<vmem>>, vector<1x128xf32>
    %14 = vector.broadcast %13 : vector<1x128xf32> to vector<8x128xf32>
    %15 = arith.addf %12, %14 : vector<8x128xf32>
    %cst_12 = arith.constant 0.000000e+00 : f32
    %16 = vector.broadcast %cst_12 : f32 to vector<8x128xf32>
    %17 = arith.cmpf ogt, %15, %16 : vector<8x128xf32>
    %cst_13 = arith.constant 0.00999999977 : f32
    %18 = vector.broadcast %cst_13 : f32 to vector<8x128xf32>
    %19 = arith.mulf %18, %15 : vector<8x128xf32>
    %20 = arith.select %17, %15, %19 : vector<8x128xi1>, vector<8x128xf32>
    %c0_14 = arith.constant 0 : index
    %c0_15 = arith.constant 0 : index
    %21 = vector.load %arg6[%c0_14, %c0_15] : memref<128x10xf32, #tpu.memory_space<vmem>>, vector<128x10xf32>
    %cst_16 = arith.constant dense<0.000000e+00> : vector<8x10xf32>
    %22 = tpu.matmul %20, %21, %cst_16 {dimension_numbers = #tpu.dot_dimension_numbers<[1], [0], [0], [1], [0, 0, 1, 1], [], []>} : vector<8x128xf32>, vector<128x10xf32>, vector<8x10xf32> -> vector<8x10xf32>
    %c0_17 = arith.constant 0 : index
    %c0_18 = arith.constant 0 : index
    %23 = vector.load %arg7[%c0_17, %c0_18] : memref<1x10xf32, #tpu.memory_space<vmem>>, vector<1x10xf32>
    %24 = vector.broadcast %23 : vector<1x10xf32> to vector<8x10xf32>
    %25 = arith.addf %22, %24 : vector<8x10xf32>
    %c0_19 = arith.constant 0 : index
    %c0_20 = arith.constant 0 : index
    %26 = vector.load %arg8[%c0_19, %c0_20] : memref<8x10xf32, #tpu.memory_space<vmem>>, vector<8x10xf32>
    tpu.vector_store %arg8[%c0_19, %c0_20], %25 {strides = array<i32>} : memref<8x10xf32, #tpu.memory_space<vmem>>, vector<8x10xf32>,
    return
  }
  func.func @transform_0(%arg0: i32) -> (i32, i32) {
    %c0_i32 = arith.constant 0 : i32
    %c0_i32_0 = arith.constant 0 : i32
    return %arg0, %c0_i32 : i32, i32
  }
  func.func @transform_1(%arg0: i32) -> (i32, i32) {
    %c0_i32 = arith.constant 0 : i32
    %c0_i32_0 = arith.constant 0 : i32
    %c0_i32_1 = arith.constant 0 : i32
    return %c0_i32, %c0_i32_0 : i32, i32
  }
  func.func @transform_2(%arg0: i32) -> (i32, i32) {
    %c0_i32 = arith.constant 0 : i32
    %c0_i32_0 = arith.constant 0 : i32
    %c0_i32_1 = arith.constant 0 : i32
    return %c0_i32, %c0_i32_0 : i32, i32
  }
  func.func @transform_3(%arg0: i32) -> (i32, i32) {
    %c0_i32 = arith.constant 0 : i32
    %c0_i32_0 = arith.constant 0 : i32
    %c0_i32_1 = arith.constant 0 : i32
    return %c0_i32, %c0_i32_0 : i32, i32
  }
  func.func @transform_4(%arg0: i32) -> (i32, i32) {
    %c0_i32 = arith.constant 0 : i32
    %c0_i32_0 = arith.constant 0 : i32
    %c0_i32_1 = arith.constant 0 : i32
    return %c0_i32, %c0_i32_0 : i32, i32
  }
  func.func @transform_5(%arg0: i32) -> (i32, i32) {
    %c0_i32 = arith.constant 0 : i32
    %c0_i32_0 = arith.constant 0 : i32
    %c0_i32_1 = arith.constant 0 : i32
    return %c0_i32, %c0_i32_0 : i32, i32
  }
  func.func @transform_6(%arg0: i32) -> (i32, i32) {
    %c0_i32 = arith.constant 0 : i32
    %c0_i32_0 = arith.constant 0 : i32
    %c0_i32_1 = arith.constant 0 : i32
    return %c0_i32, %c0_i32_0 : i32, i32
  }
  func.func @transform_7(%arg0: i32) -> (i32, i32) {
    %c0_i32 = arith.constant 0 : i32
    %c0_i32_0 = arith.constant 0 : i32
    return %arg0, %c0_i32 : i32, i32
  }
}

</mosaic_0001>

<bundles_post_ra>
// kernel: tpu_custom_call.1
= control target key start
LH: loop header
LB: loop body
LE: loop exit
PB: predicated region body
PF: predicated region fallthrough
CT: control target
= control target key end

     0   :  { %12 = vsyncpa [#allocation3], 0  ;;  %s769_s0 = inlined_call_operand.vmem [shape: f32[8,32], index: 0, kind: input, shape index: {}]   ;;  %s770_s1 = inlined_call_operand.hbm [shape: f32[32,128], index: 1, kind: input, shape index: {}]   ;;  %s771_s2 = inlined_call_operand.vmem [shape: f32[1,128], index: 2, kind: input, shape index: {}]   ;;  %s772_s3 = inlined_call_operand.vmem [shape: f32[128,128], index: 3, kind: input, shape index: {}]   ;;  %s773_s4 = inlined_call_operand.vmem [shape: f32[1,128], index: 4, kind: input, shape index: {}]   ;;  %s774_s5 = inlined_call_operand.vmem [shape: f32[128,10], index: 5, kind: input, shape index: {}]   ;;  %s775_s6 = inlined_call_operand.vmem [shape: f32[1,10], index: 6, kind: input, shape index: {}]   ;;  %s776_s7 = inlined_call_operand.hbm [shape: f32[8,10], index: 7, kind: output, shape index: {}]  }
   0x1   :  { %13 = vsyncpa [#allocation4], 0  ;;  %s569_s24 = smov [#allocation2]   ;;  %s521_s28 = scalar_lea.hbm %s770_s1, 512 }
   0x2   :  { %s21_s25 = sshll.u32 %s569_s24, 4  ;;  %p522_p0 = scmp.ne.s32.totalorder %s770_s1, %s521_s28  ;;  %s22_s25 = int_to_ptr.vmem [resolvable:$true] %s21_s25 }
   0x3   :  { %p525_p1 = scmp.lt.u32.totalorder %s521_s28, %s770_s1 }
   0x5   :  { %p527_p2 = pnand %p525_p1, %p522_p0 }
   0x7   :  { %530 = shalt.err (!%p527_p2)
}
   0x8   :  { %s531_s10 = scalar_lea.vmem %s22_s25, 512  ;;  %p536_p4 = scmp.lt.s32.totalorder %s22_s25, %s22_s25 }
   0x9   :  { %p532_p3 = scmp.ne.s32.totalorder %s22_s25, %s531_s10  ;;  %p537_p5 = scmp.lt.s32.totalorder %s531_s10, %s531_s10 }
   0xb   :  { %p538_p6 = por %p537_p5, %p536_p4 }
   0xd   :  { %p539_p7 = pnand %p538_p6, %p532_p3 }
   0xf   :  { %542 = shalt.err (!%p539_p7)
}
  0x10   :  { %s570_s11 = smov 128   ;;  %s571_s12 = smov 8  }
  0x11   :  { %27 = dma.hbm_to_vmem [thread:$0]  %s770_s1, 512, %s22_s25, [#allocation3], %s570_s11, %s570_s11, %s571_s12  }
  0x12   :  { %565 = dma.done.wait [#allocation3], 512  }
  0x13   :  { %566 = vsyncadd [#allocation3], 4294966784  ;;  %v572_v0 = vmov 0.0|0.0   ;;  %vm573_vm0 = vmmov 0   ;;  %v574_v1 = vmov 0.0   ;;  %v42_v2 = vld [vmem:[#allocation2] sm:$0xff] }
  0x14   :  { %460 = vmatprep.subr.bf16.mxu0 %v572_v0  ;;  %387 = vmatprep.mubr.msk.f32.mxu0 %vm573_vm0, %v574_v1  ;;  %v43_v3 = vld [vmem:[#allocation2 + $0x8] sm:$0xff]  ;;  %v44_v4 = vld [vmem:[#allocation2 + $0x10] sm:$0xff]  ;;  %v45_v6 = vld [vmem:[#allocation2 + $0x18] sm:$0xff]  ;;  %vm53_vm1 = vcmask 261120   ;;  %s575_s9 = smov [#allocation5]   ;;  %vm319_vm4 = vcmask 80896  }
  0x15   :  { %466 = vmatprep.subr.bf16.mxu1 %v572_v0  ;;  %422 = vmatprep.mubr.msk.f32.mxu1 %vm573_vm0, %v574_v1  ;;  %v461_v5 = vpack.c.bf16 %v43_v3, %v42_v2  ;;  %v130_v7 = vld [vmem:[%s772_s3] sm:$0xff]  ;;  %v131_v8 = vld [vmem:[%s772_s3 + $0x8] sm:$0xff]  ;;  %v132_v9 = vld [vmem:[%s772_s3 + $0x10] sm:$0xff]  ;;  %v464_v11 = vpack.c.bf16 %v45_v6, %v44_v4  ;;  %s327_s10 = sshll.u32 %s575_s9, 4  ;;  %s328_s10 = int_to_ptr.vmem [resolvable:$true] %s327_s10 }
  0x16   :  { %v133_v10 = vld [vmem:[%s772_s3 + $0x18] sm:$0xff]  ;;  %v467_v12 = vpack.c.bf16 %v131_v8, %v130_v7  ;;  %v134_v14 = vld [vmem:[%s772_s3 + $0x20] sm:$0xff]  ;;  %v135_v15 = vld [vmem:[%s772_s3 + $0x28] sm:$0xff]  ;;  %p548_p9 = scmp.lt.s32.totalorder %s328_s10, %s328_s10 }
  0x17   :  { %462 = vmatpush3.bf16.msra.mxu0 %v461_v5  ;;  %v470_v13 = vpack.c.bf16 %v133_v10, %v132_v9  ;;  %v41_v16 = vld [vmem:[%s769_s0] sm:$0xff]  ;;  %v473_v17 = vpack.c.bf16 %v135_v15, %v134_v14  ;;  %v136_v18 = vld [vmem:[%s772_s3 + $0x30] sm:$0xff]  ;;  %v137_v19 = vld [vmem:[%s772_s3 + $0x38] sm:$0xff] }
  0x18   :  { %463 = vmatprep.subr.bf16.mxu0 %v572_v0  ;;  %468 = vmatpush3.bf16.msra.mxu1 %v467_v12  ;;  %v476_v20 = vpack.c.bf16 %v137_v19, %v136_v18  ;;  %v138_v21 = vld [vmem:[%s772_s3 + $0x40] sm:$0xff]  ;;  %v139_v22 = vld [vmem:[%s772_s3 + $0x48] sm:$0xff]  ;;  %v140_v24 = vld [vmem:[%s772_s3 + $0x50] sm:$0xff] }
  0x19   :  { %469 = vmatprep.subr.bf16.mxu1 %v572_v0  ;;  %v479_v23 = vpack.c.bf16 %v139_v22, %v138_v21  ;;  %v141_v25 = vld [vmem:[%s772_s3 + $0x58] sm:$0xff]  ;;  %v142_v27 = vld [vmem:[%s772_s3 + $0x60] sm:$0xff]  ;;  %v143_v28 = vld [vmem:[%s772_s3 + $0x68] sm:$0xff] }
  0x1a   :  { %v482_v26 = vpack.c.bf16 %v141_v25, %v140_v24  ;;  %v485_v29 = vpack.c.bf16 %v143_v28, %v142_v27  ;;  %v144_v30 = vld [vmem:[%s772_s3 + $0x70] sm:$0xff]  ;;  %v145_v31 = vld [vmem:[%s772_s3 + $0x78] sm:$0xff]  ;;  %v226_v33 = vld [vmem:[%s774_s5] sm:$0xff] }
  0x1b   :  { %465 = vmatpush3.bf16.msra.mxu0 %v464_v11  ;;  %v488_v32 = vpack.c.bf16 %v145_v31, %v144_v30  ;;  %v227_v34 = vld [vmem:[%s774_s5 + $0x8] sm:$0xff]  ;;  %v228_v35 = vld [vmem:[%s774_s5 + $0x10] sm:$0xff]  ;;  %v229_v37 = vld [vmem:[%s774_s5 + $0x18] sm:$0xff] }
  0x1c   :  { %490 = vmatprep.subr.bf16.mxu0 %v572_v0  ;;  %471 = vmatpush3.bf16.msra.mxu1 %v470_v13  ;;  %v491_v36 = vpack.c.bf16 %v227_v34, %v226_v33  ;;  %v494_v38 = vpack.c.bf16 %v229_v37, %v228_v35  ;;  %v230_v39 = vld [vmem:[%s774_s5 + $0x20] sm:$0xff]  ;;  %v231_v40 = vld [vmem:[%s774_s5 + $0x28] sm:$0xff]  ;;  %v232_v42 = vld [vmem:[%s774_s5 + $0x30] sm:$0xff] }
  0x1d   :  { %472 = vmatprep.subr.bf16.mxu1 %v572_v0  ;;  %v497_v41 = vpack.c.bf16 %v231_v40, %v230_v39  ;;  %v233_v43 = vld [vmem:[%s774_s5 + $0x38] sm:$0xff]  ;;  %v234_v45 = vld [vmem:[%s774_s5 + $0x40] sm:$0xff]  ;;  %v235_v46 = vld [vmem:[%s774_s5 + $0x48] sm:$0xff] }
  0x1e   :  { %388 = vmatmul.mubr.msk.f32.vlgmr.msra.gmra.mrb[0].mxu0 %vm53_vm1, %v41_v16  ;;  %v500_v44 = vpack.c.bf16 %v233_v43, %v232_v42  ;;  %v503_v47 = vpack.c.bf16 %v235_v46, %v234_v45  ;;  %v236_v48 = vld [vmem:[%s774_s5 + $0x50] sm:$0xff]  ;;  %v237_v49 = vld [vmem:[%s774_s5 + $0x58] sm:$0xff]  ;;  %v238_v51 = vld [vmem:[%s774_s5 + $0x60] sm:$0xff] }
  0x1f   :  { %457 = vmatprep.mubr.msk.f32.mxu0 %vm573_vm0, %v574_v1  ;;  %492 = vmatpush3.bf16.msra.mxu0 %v491_v36  ;;  %v506_v50 = vpack.c.bf16 %v237_v49, %v236_v48  ;;  %v239_v52 = vld [vmem:[%s774_s5 + $0x68] sm:$0xff]  ;;  %v336_v54 = vld [vmem:[%s771_s2] ss:$0 sm:$0xff]  ;;  %v240_v60 = vld [vmem:[%s774_s5 + $0x70] sm:$0xff] }
  0x20   :  { %474 = vmatpush3.bf16.msra.mxu1 %v473_v17  ;;  %493 = vmatprep.subr.bf16.mxu0 %v572_v0  ;;  %v509_v53 = vpack.c.bf16 %v239_v52, %v238_v51  ;;  %v241_v61 = vld [vmem:[%s774_s5 + $0x78] sm:$0xff]  ;;  %v338_v63 = vld [vmem:[%s773_s4] ss:$0 sm:$0xff]  ;;  %s543_s4 = scalar_lea.vmem %s328_s10, 128 }
  0x21   :  { %475 = vmatprep.subr.bf16.mxu1 %v572_v0  ;;  %v512_v62 = vpack.c.bf16 %v241_v61, %v240_v60  ;;  %v339_v5 = vld [vmem:[%s775_s6] ss:$0 sm:$0xff]  ;;  %p544_p8 = scmp.ne.s32.totalorder %s328_s10, %s543_s4  ;;  %p549_p10 = scmp.lt.s32.totalorder %s543_s4, %s543_s4 }
  0x23   :  { %495 = vmatpush3.bf16.msra.mxu0 %v494_v38  ;;  %p550_p11 = por %p549_p10, %p548_p9 }
  0x24   :  { %477 = vmatpush3.bf16.msra.mxu1 %v476_v20  ;;  %496 = vmatprep.subr.bf16.mxu0 %v572_v0 }
  0x25   :  { %478 = vmatprep.subr.bf16.mxu1 %v572_v0  ;;  %p551_p12 = pnand %p550_p11, %p544_p8 }
  0x27   :  { %498 = vmatpush3.bf16.msra.mxu0 %v497_v41 }
  0x28   :  { %480 = vmatpush3.bf16.msra.mxu1 %v479_v23  ;;  %499 = vmatprep.subr.bf16.mxu0 %v572_v0 }
  0x29   :  { %481 = vmatprep.subr.bf16.mxu1 %v572_v0 }
  0x2b   :  { %501 = vmatpush3.bf16.msra.mxu0 %v500_v44 }
  0x2c   :  { %483 = vmatpush3.bf16.msra.mxu1 %v482_v26  ;;  %502 = vmatprep.subr.bf16.mxu0 %v572_v0 }
  0x2d   :  { %484 = vmatprep.subr.bf16.mxu1 %v572_v0 }
  0x2f   :  { %504 = vmatpush3.bf16.msra.mxu0 %v503_v47 }
  0x30   :  { %486 = vmatpush3.bf16.msra.mxu1 %v485_v29  ;;  %505 = vmatprep.subr.bf16.mxu0 %v572_v0 }
  0x31   :  { %487 = vmatprep.subr.bf16.mxu1 %v572_v0 }
  0x33   :  { %507 = vmatpush3.bf16.msra.mxu0 %v506_v50 }
  0x34   :  { %489 = vmatpush3.bf16.msra.mxu1 %v488_v32  ;;  %508 = vmatprep.subr.bf16.mxu0 %v572_v0 }
  0x37   :  { %510 = vmatpush3.bf16.msra.mxu0 %v509_v53 }
  0x38   :  { %511 = vmatprep.subr.bf16.mxu0 %v572_v0 }
  0x3b   :  { %513 = vmatpush3.bf16.msra.mxu0 %v512_v62 }
  0xf1   :  { %v123_v55 = vpop.f32.mrb[0].mxu0 }
  0xf2   :  { %v124_v56 = vadd.f32 %v336_v54, %v123_v55  ;;  %v389_v57 = vpop.f32.mrb[1].mxu0 }
  0xf4   :  { %v128_v58 = vmul.f32 0.01, %v124_v56  ;;  %vm127_vm2 = vcmp.gt.f32.partialorder %v124_v56, 0.0 }
  0xf6   :  { %v129_v59 = vsel %vm127_vm2, %v124_v56, %v128_v58 }
  0xf7   :  { %423 = vmatmul.mubr.f32.vlgmr.msra.gmra.mrb[0].mxu1 %v129_v59 }
 0x1ca   :  { %v219_v0 = vpop.f32.mrb[0].mxu1 }
 0x1cb   :  { %v220_v1 = vadd.f32 %v338_v63, %v219_v0  ;;  %v424_v2 = vpop.f32.mrb[1].mxu1 }
 0x1cd   :  { %vm223_vm3 = vcmp.gt.f32.partialorder %v220_v1, 0.0  ;;  %v224_v3 = vmul.f32 0.01, %v220_v1 }
 0x1cf   :  { %v225_v4 = vsel %vm223_vm3, %v220_v1, %v224_v3 }
 0x1d0   :  { %458 = vmatmul.mubr.f32.vlgmr.msra.gmra.mrb[2].mxu0 %v225_v4 }
 0x2a3   :  { %v315_v6 = vpop.f32.mrb[2].mxu0 }
 0x2a4   :  { %v316_v7 = vadd.f32 %v339_v5, %v315_v6  ;;  %v459_v8 = vpop.f32.mrb[3].mxu0 }
 0x2a6   :  { %320 = vst.msk [vmem:[#allocation5] sm:$0xff] %vm319_vm4, %v316_v7 }
 0x2a7   :  { %554 = shalt.err (!%p551_p12)
}
 0x2a8   :  { %s555_s12 = scalar_lea.hbm %s776_s7, 128 }
 0x2a9   :  { %p556_p13 = scmp.ne.s32.totalorder %s776_s7, %s555_s12  ;;  %p559_p0 = scmp.lt.u32.totalorder %s555_s12, %s776_s7 }
 0x2ab   :  { %p561_p1 = pnand %p559_p0, %p556_p13 }
 0x2ad   :  { %564 = shalt.err (!%p561_p1)
}
 0x2ae   :  { %330 = dma.vmem_to_hbm [thread:$0]  %s328_s10, 128, %s776_s7, [#allocation4]  }
 0x2af   :  { %567 = dma.done.wait [#allocation4], 128  }
 0x2b0   :  { %568 = vsyncadd [#allocation4], 4294967168 }
 0x2b1   :  { %334 = vsyncpa [#allocation3], 1 }
 0x2b2   :  { %335 = vsyncpa [#allocation4], 1 }

</bundles_post_ra>
